<compile_context>
chip_gen: v6e
topology: v6e:2x2x1
jax: 0.10.0
libtpu: 0.0.40
codegen_flags: <defaults>
</compile_context>

<pallas_src>
import functools
import math

import jax
import jax.numpy as jnp
from jax.experimental import pallas as pl
from jax.experimental.pallas import tpu as pltpu


def _label_smoothing_kernel(x_ref, t_ref, o_ref, acc_ref, *, confidence,
                            smooth_val, padding_idx, row_const):
    j = pl.program_id(1)
    tn, tv = x_ref.shape

    x = x_ref[...].astype(jnp.float32)            # (TN, TV)  upcast in-vreg
    t = t_ref[...]                                # (TN, 1) int32
    is_pad_row = t == padding_idx                 # (TN, 1)

    # Initialize the accumulator at the first vocab tile of each row tile with
    # the constant  sum_y y*log(y)  contribution of the non-pad rows (lane 0).
    @pl.when(j == 0)
    def _():
        rc = jnp.where(is_pad_row, 0.0, row_const)          # (TN, 1)
        rc8 = rc.reshape(tn // 8, 8, 1).sum(axis=0)         # (8, 1)  VPU adds
        lane = jax.lax.broadcasted_iota(jnp.int32, (8, 128), 1)
        acc_ref[...] = jnp.where(lane == 0, rc8, 0.0)

    # coeff == true_dist (confidence / smooth_val / 0), built with compares
    # and selects only; logs of these values are compile-time constants above.
    col = jax.lax.broadcasted_iota(jnp.int32, (tn, tv), 1) + j * tv
    coeff = jnp.where(col == t, confidence, smooth_val)
    coeff = jnp.where(col == padding_idx, 0.0, coeff)
    coeff = jnp.where(is_pad_row, 0.0, coeff)

    # sum(coeff * x) over the tile, folded vreg-wise to (8, 128): pure VPU adds
    # (no cross-lane/sublane XLU reduce on the per-step critical path).
    cross = (coeff * x).reshape(tn // 8, 8, tv // 128, 128).sum(axis=(0, 2))
    acc_ref[...] = acc_ref[...] - cross

    @pl.when(j == pl.num_programs(1) - 1)
    def _():
        o_ref[0] = acc_ref[...]


def _round_up(a: int, b: int) -> int:
    return (a + b - 1) // b * b


def label_smoothing_loss(x, target, *, tar_len, padding_idx, smoothing=0.0,
                         tn_max=512, tv_max=2048):
    """x: (N, V) float log-probs (f32 or bf16), target: (N,) int.

    Returns the scalar f32 KLDivLoss(size_average=False) against the smoothed
    target distribution.
    """
    n, v = x.shape
    assert v == tar_len
    assert tar_len > 2, "smoothing / (tar_len - 2) requires tar_len > 2"

    confidence = 1.0 - smoothing
    smooth_val = smoothing / (tar_len - 2)
    # sum_y y*log(y) for one non-pad row, with the 0*log(0) := 0 convention.
    row_const = 0.0
    if confidence > 0.0:
        row_const += confidence * math.log(confidence)
    if smooth_val > 0.0:
        row_const += (tar_len - 2) * smooth_val * math.log(smooth_val)

    # Pad to tile-able shape.  Pad rows get target == padding_idx (coeff == 0
    # and excluded from the constant term); pad columns see x == 0, so their
    # finite coeff contributes exactly 0.
    n_pad = _round_up(n, 8)
    v_pad = _round_up(v, 128)
    if n_pad > tn_max:
        n_pad = _round_up(n_pad, tn_max)
        tn = tn_max
    else:
        tn = n_pad
    if v_pad > tv_max:
        v_pad = _round_up(v_pad, tv_max)
        tv = tv_max
    else:
        tv = v_pad

    target = target.astype(jnp.int32)
    if (n_pad, v_pad) != (n, v):
        x = jnp.pad(x, ((0, n_pad - n), (0, v_pad - v)))
        target = jnp.pad(target, (0, n_pad - n), constant_values=padding_idx)
    t2d = target.reshape(n_pad, 1)

    grid = (n_pad // tn, v_pad // tv)

    kernel = functools.partial(
        _label_smoothing_kernel,
        confidence=float(confidence),      # plain Python floats: baked in as
        smooth_val=float(smooth_val),      # compile-time constants (fixes the
        padding_idx=int(padding_idx),      # "captures constants" error)
        row_const=float(row_const),
    )

    partials = pl.pallas_call(
        kernel,
        out_shape=jax.ShapeDtypeStruct((grid[0], 8, 128), jnp.float32),
        grid_spec=pltpu.PrefetchScalarGridSpec(
            num_scalar_prefetch=0,
            grid=grid,
            in_specs=[
                pl.BlockSpec((tn, tv), lambda i, j: (i, j)),
                pl.BlockSpec((tn, 1), lambda i, j: (i, 0)),
            ],
            out_specs=pl.BlockSpec((1, 8, 128), lambda i, j: (i, 0, 0)),
            scratch_shapes=[pltpu.VMEM((8, 128), jnp.float32)],
        ),
        compiler_params=pltpu.CompilerParams(
            dimension_semantics=("parallel", "arbitrary")),
    )(x, t2d)

    # Tiny cross-tile reduction done in XLA.
    return jnp.sum(partials)


def _reference(x, target, *, tar_len, padding_idx, smoothing):
    confidence = 1.0 - smoothing
    smooth_val = smoothing / (tar_len - 2)
    _, v = x.shape
    col = jnp.arange(v)[None, :]
    t = target[:, None]
    td = jnp.where(col == t, confidence, smooth_val)
    td = jnp.where(col == padding_idx, 0.0, td)
    td = jnp.where(t == padding_idx, 0.0, td)
    safe = jnp.where(td > 0, td, 1.0)
    return jnp.sum(jnp.where(td > 0, td * (jnp.log(safe) - x.astype(jnp.float32)), 0.0))


if __name__ == "__main__":
    padding_idx = 0
    smoothing = 0.1
    key = jax.random.PRNGKey(0)

    def run_case(n, v, k):
        k1, k2 = jax.random.split(k)
        logits = jax.random.normal(k1, (n, v), dtype=jnp.float32)
        x = jax.nn.log_softmax(logits, axis=-1)             # log-probabilities
        target = jax.random.randint(k2, (n,), 0, v, dtype=jnp.int32)
        target = target.at[n // 2].set(padding_idx)         # a padded position
        loss = label_smoothing_loss(
            x, target, tar_len=v, padding_idx=padding_idx, smoothing=smoothing)
        loss = jax.block_until_ready(loss)
        ref = _reference(x, target, tar_len=v, padding_idx=padding_idx,
                         smoothing=smoothing)
        assert jnp.allclose(loss, ref, rtol=2e-5, atol=1e-4), (n, v, loss, ref)

    # batch=2, seq=8 token positions over a 256-word vocab (tile-aligned) ...
    run_case(16, 256, jax.random.fold_in(key, 0))
    # ... and a deliberately unaligned shape to exercise the padding path.
    run_case(10, 200, jax.random.fold_in(key, 1))

    print("KERNEL_OK")
</pallas_src>

<mosaic_0001>
module attributes {stable_mosaic.version = 11 : i64} {
  func.func @_label_smoothing_kernel(%arg0: i32, %arg1: i32, %arg2: memref<16x256xf32, #tpu.memory_space<vmem>>, %arg3: memref<16x1xi32, #tpu.memory_space<vmem>>, %arg4: memref<1x8x128xf32, #tpu.memory_space<vmem>>, %arg5: memref<8x128xf32, #tpu.memory_space<vmem>>) attributes {dimension_semantics = [#tpu.dimension_semantics<parallel>, #tpu.dimension_semantics<arbitrary>], iteration_bounds = array<i64: 1, 1>, scalar_prefetch = 0 : i64, scratch_operands = 1 : i64, tpu.core_type = #tpu.core_type<tc>, window_params = [{transform_indices = @transform_0, window_bounds = array<i64: 16, 256>}, {transform_indices = @transform_1, window_bounds = array<i64: 16, 1>}, {transform_indices = @transform_2, window_bounds = array<i64: 1, 8, 128>}]} {
    %c0 = arith.constant 0 : index
    %c0_0 = arith.constant 0 : index
    %0 = vector.load %arg2[%c0, %c0_0] : memref<16x256xf32, #tpu.memory_space<vmem>>, vector<16x256xf32>
    %c0_1 = arith.constant 0 : index
    %c0_2 = arith.constant 0 : index
    %1 = vector.load %arg3[%c0_1, %c0_2] : memref<16x1xi32, #tpu.memory_space<vmem>>, vector<16x1xi32>
    %c0_i32 = arith.constant 0 : i32
    %2 = vector.broadcast %c0_i32 : i32 to vector<16x1xi32>
    %3 = arith.cmpi eq, %1, %2 : vector<16x1xi32>
    %c0_i32_3 = arith.constant 0 : i32
    %4 = arith.cmpi eq, %arg1, %c0_i32_3 : i32
    %5 = arith.extui %4 : i1 to i32
    %c0_i32_4 = arith.constant 0 : i32
    %6 = arith.cmpi ne, %5, %c0_i32_4 : i32
    scf.if %6 {
      %cst_16 = arith.constant 0.000000e+00 : f32
      %cst_17 = arith.constant -0.878816425 : f32
      %33 = vector.broadcast %cst_16 : f32 to vector<16x1xf32>
      %34 = vector.broadcast %cst_17 : f32 to vector<16x1xf32>
      %35 = arith.select %3, %33, %34 : vector<16x1xi1>, vector<16x1xf32>
      %36 = vector.shape_cast %35 : vector<16x1xf32> to vector<2x8x1xf32>
      %cst_18 = arith.constant dense<0.000000e+00> : vector<8x1xf32>
      %37 = vector.multi_reduction <add>, %36, %cst_18 [0] : vector<2x8x1xf32> to vector<8x1xf32>
      %38 = tpu.iota {dimensions = array<i32: 1>} : vector<8x128xi32>
      %c0_i32_19 = arith.constant 0 : i32
      %39 = vector.broadcast %c0_i32_19 : i32 to vector<8x128xi32>
      %40 = arith.cmpi eq, %38, %39 : vector<8x128xi32>
      %cst_20 = arith.constant 0.000000e+00 : f32
      %41 = vector.shape_cast %37 : vector<8x1xf32> to vector<8x1xf32>
      %42 = vector.broadcast %41 : vector<8x1xf32> to vector<8x128xf32>
      %43 = vector.broadcast %cst_20 : f32 to vector<8x128xf32>
      %44 = arith.select %40, %42, %43 : vector<8x128xi1>, vector<8x128xf32>
      %c0_21 = arith.constant 0 : index
      %c0_22 = arith.constant 0 : index
      %45 = vector.load %arg5[%c0_21, %c0_22] : memref<8x128xf32, #tpu.memory_space<vmem>>, vector<8x128xf32>
      tpu.vector_store %arg5[%c0_21, %c0_22], %44 {strides = array<i32>} : memref<8x128xf32, #tpu.memory_space<vmem>>, vector<8x128xf32>,
    } else {
    }
    %7 = tpu.iota {dimensions = array<i32: 1>} : vector<16x256xi32>
    %c256_i32 = arith.constant 256 : i32
    %8 = arith.muli %arg1, %c256_i32 : i32
    %9 = vector.broadcast %8 : i32 to vector<16x256xi32>
    %10 = arith.addi %7, %9 : vector<16x256xi32>
    %11 = vector.broadcast %1 : vector<16x1xi32> to vector<16x256xi32>
    %12 = arith.cmpi eq, %10, %11 : vector<16x256xi32>
    %cst = arith.constant 0.899999976 : f32
    %cst_5 = arith.constant 3.93700786E-4 : f32
    %13 = vector.broadcast %cst : f32 to vector<16x256xf32>
    %14 = vector.broadcast %cst_5 : f32 to vector<16x256xf32>
    %15 = arith.select %12, %13, %14 : vector<16x256xi1>, vector<16x256xf32>
    %c0_i32_6 = arith.constant 0 : i32
    %16 = vector.broadcast %c0_i32_6 : i32 to vector<16x256xi32>
    %17 = arith.cmpi eq, %10, %16 : vector<16x256xi32>
    %cst_7 = arith.constant 0.000000e+00 : f32
    %18 = vector.broadcast %cst_7 : f32 to vector<16x256xf32>
    %19 = arith.select %17, %18, %15 : vector<16x256xi1>, vector<16x256xf32>
    %cst_8 = arith.constant 0.000000e+00 : f32
    %20 = vector.shape_cast %3 : vector<16x1xi1> to vector<16x1xi1>
    %21 = vector.broadcast %20 : vector<16x1xi1> to vector<16x256xi1>
    %22 = vector.broadcast %cst_8 : f32 to vector<16x256xf32>
    %23 = arith.select %21, %22, %19 : vector<16x256xi1>, vector<16x256xf32>
    %24 = arith.mulf %23, %0 : vector<16x256xf32>
    %25 = vector.shape_cast %24 : vector<16x256xf32> to vector<2x8x2x128xf32>
    %cst_9 = arith.constant dense<0.000000e+00> : vector<8x128xf32>
    %26 = vector.multi_reduction <add>, %25, %cst_9 [0, 2] : vector<2x8x2x128xf32> to vector<8x128xf32>
    %c0_10 = arith.constant 0 : index
    %c0_11 = arith.constant 0 : index
    %27 = vector.load %arg5[%c0_10, %c0_11] : memref<8x128xf32, #tpu.memory_space<vmem>>, vector<8x128xf32>
    %28 = arith.subf %27, %26 : vector<8x128xf32>
    %c0_12 = arith.constant 0 : index
    %c0_13 = arith.constant 0 : index
    %29 = vector.load %arg5[%c0_12, %c0_13] : memref<8x128xf32, #tpu.memory_space<vmem>>, vector<8x128xf32>
    tpu.vector_store %arg5[%c0_12, %c0_13], %28 {strides = array<i32>} : memref<8x128xf32, #tpu.memory_space<vmem>>, vector<8x128xf32>,
    %c0_i32_14 = arith.constant 0 : i32
    %30 = arith.cmpi eq, %arg1, %c0_i32_14 : i32
    %31 = arith.extui %30 : i1 to i32
    %c0_i32_15 = arith.constant 0 : i32
    %32 = arith.cmpi ne, %31, %c0_i32_15 : i32
    scf.if %32 {
      %c0_16 = arith.constant 0 : index
      %c0_17 = arith.constant 0 : index
      %33 = vector.load %arg5[%c0_16, %c0_17] : memref<8x128xf32, #tpu.memory_space<vmem>>, vector<8x128xf32>
      %c0_18 = arith.constant 0 : index
      %c0_19 = arith.constant 0 : index
      %c0_20 = arith.constant 0 : index
      %34 = vector.load %arg4[%c0_18, %c0_19, %c0_20] : memref<1x8x128xf32, #tpu.memory_space<vmem>>, vector<1x8x128xf32>
      %35 = vector.shape_cast %34 : vector<1x8x128xf32> to vector<8x128xf32>
      %36 = vector.shape_cast %33 : vector<8x128xf32> to vector<1x8x128xf32>
      tpu.vector_store %arg4[%c0_18, %c0_19, %c0_20], %36 {strides = array<i32>} : memref<1x8x128xf32, #tpu.memory_space<vmem>>, vector<1x8x128xf32>,
    } else {
    }
    return
  }
  func.func @transform_0(%arg0: i32, %arg1: i32) -> (i32, i32) {
    %c0_i32 = arith.constant 0 : i32
    return %arg0, %arg1 : i32, i32
  }
  func.func @transform_1(%arg0: i32, %arg1: i32) -> (i32, i32) {
    %c0_i32 = arith.constant 0 : i32
    %c0_i32_0 = arith.constant 0 : i32
    return %arg0, %c0_i32 : i32, i32
  }
  func.func @transform_2(%arg0: i32, %arg1: i32) -> (i32, i32, i32) {
    %c0_i32 = arith.constant 0 : i32
    %c0_i32_0 = arith.constant 0 : i32
    %c0_i32_1 = arith.constant 0 : i32
    return %arg0, %c0_i32, %c0_i32_0 : i32, i32, i32
  }
}

</mosaic_0001>

<bundles_post_ra>
// kernel: tpu_custom_call.1
= control target key start
LH: loop header
LB: loop body
LE: loop exit
PB: predicated region body
PF: predicated region fallthrough
CT: control target
= control target key end

     0   :  { %7 = vsyncpa [#allocation4], 0  ;;  %s471_s0 = inlined_call_operand.hbm [shape: f32[16,256], index: 0, kind: input, shape index: {}]   ;;  %s472_s1 = inlined_call_operand.vmem [shape: s32[16,1], index: 1, kind: input, shape index: {}]   ;;  %s473_s2 = inlined_call_operand.hbm [shape: f32[1,8,128], index: 2, kind: output, shape index: {}]  }
   0x1   :  { %8 = vsyncpa [#allocation5], 0  ;;  %s406_s9 = smov [#allocation3]  }
   0x2   :  { %s14_s10 = sshll.u32 %s406_s9, 4  ;;  %s15_s10 = int_to_ptr.vmem [resolvable:$true] %s14_s10 }
   0x3   :  { %s370_s11 = scalar_lea.vmem %s15_s10, 512  ;;  %p375_p1 = scmp.lt.s32.totalorder %s15_s10, %s15_s10 }
   0x4   :  { %p371_p0 = scmp.ne.s32.totalorder %s15_s10, %s370_s11  ;;  %p376_p2 = scmp.lt.s32.totalorder %s370_s11, %s370_s11 }
   0x6   :  { %p377_p3 = por %p376_p2, %p375_p1 }
   0x8   :  { %p378_p4 = pnand %p377_p3, %p371_p0 }
   0xa   :  { %381 = shalt.err (!%p378_p4)
}
   0xb   :  { %s407_s12 = smov 256   ;;  %s408_s13 = smov 16  }
   0xc   :  { %20 = dma.hbm_to_vmem [thread:$0]  %s471_s0, 512, %s15_s10, [#allocation4], %s407_s12, %s407_s12, %s408_s13  }
   0xd   :  { %402 = dma.done.wait [#allocation4], 512  }
   0xe   :  { %403 = vsyncadd [#allocation4], 4294966784  ;;  %v409_v0 = vmov 0   ;;  %v30_v1 = vld [vmem:[%s472_s1] sm:$0xff]  ;;  %vm40_vm0 = vcmask 7168   ;;  %v31_v2 = vld [vmem:[%s472_s1 + $0x8] sm:$0xff]  ;;  %v44_v11 = vlaneseq }
   0xf   :  { %360 = vset.pattern.permute.xlu0 %v409_v0  ;;  %361 = vset.pattern.permute.xlu1 %v409_v0  ;;  %vm32_vm1 = vcmp.eq.s32.totalorder %v30_v1, 0  ;;  %vm33_vm2 = vcmp.eq.s32.totalorder %v31_v2, 0  ;;  %v410_v4 = vmov -0.8788164   ;;  %v411_v13 = vmov 1983009808  }
  0x10   :  { %62 = vperm.xlu0 %360, %v30_v1   ;;  %v81_v3 = vsel %vm32_vm1, 1, %v409_v0  ;;  %v38_v5 = vsel %vm32_vm1, 0.0, %v410_v4  ;;  %v39_v6 = vsel %vm33_vm2, 0.0, %v410_v4  ;;  %v82_v9 = vsel %vm33_vm2, 1, %v409_v0  ;;  %v26_v25 = vld [vmem:[#allocation3] sm:$0xff]  ;;  %v27_v26 = vld [vmem:[#allocation3 + $0x8] sm:$0xff] }
  0x11   :  { %84 = vperm.xlu1 %361, %v81_v3   ;;  %v41_v7 = vsel %vm40_vm0, %v38_v5, 0.0  ;;  %v42_v8 = vsel %vm40_vm0, %v39_v6, 0.0  ;;  %v440_v12 = vand.u32 127, %v44_v11  ;;  %v101_v14 = vunpack.c.l.s4 %v411_v13  ;;  %v28_v49 = vld [vmem:[#allocation3 + $0x10] sm:$0xff]  ;;  %v29_v50 = vld [vmem:[#allocation3 + $0x18] sm:$0xff]  ;;  %s415_s0 = smov [#allocation6]  }
  0x12   :  { %v43_v10 = vadd.f32 %v42_v8, %v41_v7  ;;  %v104_v17 = vshrl.u32 %v44_v11, 7  ;;  %v412_v18 = vmov 1934713408   ;;  %v413_v21 = vmov 0.0003937008   ;;  %s341_s1 = sshll.u32 %s415_s0, 4  ;;  %s342_s1 = int_to_ptr.vmem [resolvable:$true] %s341_s1 }
  0x13   :  { %v56_v15 = vadd.s32 128, %v440_v12  ;;  %v102_v16 = vunpack.c.0.s8 %v101_v14  ;;  %v132_v19 = vunpack.c.l.s4 %v412_v18  ;;  %vm46_vm3 = vcmp.eq.s32.totalorder %v440_v12, 0  ;;  %s382_s20 = scalar_lea.vmem %s342_s1, 128  ;;  %p387_p6 = scmp.lt.s32.totalorder %s342_s1, %s342_s1 }
  0x14   :  { %65 = vperm.xlu0 %360, %v31_v2   ;;  %v414_v38 = vmov 0.0   ;;  %vm231_vm10 = vcmask 1041408   ;;  %vm313_vm11 = vcmask 1041409   ;;  %vm315_vm12 = vcmask 1042434   ;;  %p383_p5 = scmp.ne.s32.totalorder %s342_s1, %s382_s20  ;;  %p388_p7 = scmp.lt.s32.totalorder %s382_s20, %s382_s20 }
  0x15   :  { %87 = vperm.xlu1 %361, %v82_v9   ;;  %v105_v27 = vsub.s32 %v102_v16, %v104_v17  ;;  %v133_v29 = vunpack.c.0.s8 %v132_v19  ;;  %vm317_vm13 = vcmask 1043459   ;;  %vm319_vm14 = vcmask 1044484  }
  0x16   :  { %vm321_vm15 = vcmask 1045509   ;;  %vm323_vm0 = vcmask 1046534   ;;  %vm325_vm1 = vcmask 1047559   ;;  %p389_p8 = por %p388_p7, %p387_p6 }
  0x17   :  { %v136_v43 = vsub.s32 %v133_v29, %v104_v17 }
  0x18   :  { %49 = vperm.xlu0 %360, %v43_v10   ;;  %p390_p9 = pnand %p389_p8, %p383_p5 }
  0x8b   :  { %v63_v20 = vpop.permute.xlu0 %62 }
  0x8c   :  { %vm67_vm4 = vcmp.eq.s32.totalorder %v440_v12, %v63_v20  ;;  %vm68_vm5 = vcmp.eq.s32.totalorder %v56_v15, %v63_v20  ;;  %v85_v24 = vpop.permute.xlu1 %84 }
  0x8d   :  { %v71_v22 = vsel %vm67_vm4, 0.9, %v413_v21  ;;  %v72_v23 = vsel %vm68_vm5, 0.9, %v413_v21  ;;  %vm89_vm6 = vcmp.eq.s32.totalorder %v85_v24, 1 }
  0x8e   :  { %v77_v28 = vsel %vm46_vm3, 0.0, %v71_v22  ;;  %v92_v31 = vsel %vm89_vm6, 0.0, %v72_v23 }
  0x8f   :  { %v91_v30 = vsel %vm89_vm6, 0.0, %v77_v28  ;;  %v66_v32 = vpop.permute.xlu0 %65  ;;  %v96_v34 = vmul.f32 %v92_v31, %v27_v26 }
  0x90   :  { %v95_v33 = vmul.f32 %v91_v30, %v26_v25  ;;  %vm69_vm7 = vcmp.eq.s32.totalorder %v440_v12, %v66_v32  ;;  %vm70_vm8 = vcmp.eq.s32.totalorder %v56_v15, %v66_v32  ;;  %v88_v37 = vpop.permute.xlu1 %87 }
  0x91   :  { %v73_v35 = vsel %vm69_vm7, 0.9, %v413_v21  ;;  %v74_v36 = vsel %vm70_vm8, 0.9, %v413_v21  ;;  %v114_v41 = vcombine.high %v96_v34, %v414_v38  ;;  %v121_v42 = vrot.slane %v96_v34, %v105_v27 }
  0x92   :  { %v99_v39 = vcombine.high %v95_v33, %v414_v38  ;;  %v106_v40 = vrot.slane %v95_v33, %v105_v27  ;;  %v79_v44 = vsel %vm46_vm3, 0.0, %v73_v35  ;;  %vm90_vm9 = vcmp.eq.s32.totalorder %v88_v37, 1 }
  0x93   :  { %v128_v46 = vrot.slane %v114_v41, %v105_v27  ;;  %v93_v51 = vsel %vm90_vm9, 0.0, %v79_v44  ;;  %v94_v52 = vsel %vm90_vm9, 0.0, %v74_v36 }
  0x94   :  { %v113_v45 = vrot.slane %v99_v39, %v105_v27  ;;  %v129_v47 = vcombine.low %v106_v40, %v121_v42  ;;  %v130_v48 = vcombine.high %v106_v40, %v121_v42  ;;  %v97_v57 = vmul.f32 %v93_v51, %v28_v49 }
  0x95   :  { %v98_v58 = vmul.f32 %v94_v52, %v29_v50 }
  0x96   :  { %v145_v53 = vcombine.low %v113_v45, %v128_v46  ;;  %v146_v54 = vcombine.high %v113_v45, %v128_v46  ;;  %v137_v55 = vrot.slane %v129_v47, %v136_v43  ;;  %v144_v56 = vrot.slane %v130_v48, %v136_v43 }
  0x97   :  { %v165_v61 = vcombine.high %v97_v57, %v414_v38  ;;  %v172_v62 = vrot.slane %v97_v57, %v105_v27  ;;  %v180_v2 = vcombine.high %v98_v58, %v414_v38  ;;  %v187_v3 = vrot.slane %v98_v58, %v105_v27 }
  0x98   :  { %v153_v59 = vrot.slane %v145_v53, %v136_v43  ;;  %v160_v60 = vrot.slane %v146_v54, %v136_v43  ;;  %v161_v63 = vcombine.high %v137_v55, %v414_v38  ;;  %v162_v0 = vcombine.high %v144_v56, %v414_v38 }
  0x99   :  { %v179_v1 = vrot.slane %v165_v61, %v105_v27  ;;  %v194_v6 = vrot.slane %v180_v2, %v105_v27  ;;  %v232_v7 = vsel %vm231_vm10, %v137_v55, 0.0  ;;  %v250_v8 = vsel %vm231_vm10, %v144_v56, 0.0 }
  0x9a   :  { %v163_v4 = vcombine.high %v153_v59, %v414_v38  ;;  %v164_v5 = vcombine.high %v160_v60, %v414_v38  ;;  %v195_v9 = vcombine.low %v172_v62, %v187_v3  ;;  %v196_v10 = vcombine.high %v172_v62, %v187_v3 }
  0x9b   :  { %v241_v11 = vsel %vm231_vm10, %v161_v63, 0.0  ;;  %v259_v13 = vsel %vm231_vm10, %v162_v0, 0.0  ;;  %v211_v14 = vcombine.low %v179_v1, %v194_v6  ;;  %v212_v15 = vcombine.high %v179_v1, %v194_v6 }
  0x9c   :  { %v268_v16 = vsel %vm231_vm10, %v153_v59, 0.0  ;;  %v286_v17 = vsel %vm231_vm10, %v160_v60, 0.0  ;;  %v203_v18 = vrot.slane %v195_v9, %v136_v43  ;;  %v210_v19 = vrot.slane %v196_v10, %v136_v43 }
  0x9d   :  { %v277_v20 = vsel %vm231_vm10, %v163_v4, 0.0  ;;  %v219_v21 = vrot.slane %v211_v14, %v136_v43  ;;  %v226_v22 = vrot.slane %v212_v15, %v136_v43  ;;  %v295_v23 = vsel %vm231_vm10, %v164_v5, 0.0 }
  0x9e   :  { %v227_v24 = vcombine.high %v203_v18, %v414_v38  ;;  %v228_v25 = vcombine.high %v210_v19, %v414_v38  ;;  %v233_v26 = vsel %vm231_vm10, %v203_v18, 0.0  ;;  %v251_v27 = vsel %vm231_vm10, %v210_v19, 0.0 }
  0x9f   :  { %v229_v28 = vcombine.high %v219_v21, %v414_v38  ;;  %v230_v29 = vcombine.high %v226_v22, %v414_v38  ;;  %v234_v30 = vadd.f32 %v233_v26, %v232_v7  ;;  %v252_v31 = vadd.f32 %v251_v27, %v250_v8 }
  0xa0   :  { %v242_v32 = vsel %vm231_vm10, %v227_v24, 0.0  ;;  %v260_v33 = vsel %vm231_vm10, %v228_v25, 0.0  ;;  %v269_v34 = vsel %vm231_vm10, %v219_v21, 0.0  ;;  %v287_v35 = vsel %vm231_vm10, %v226_v22, 0.0 }
  0xa1   :  { %v235_v36 = vrot.slane %v234_v30, 4  ;;  %v243_v37 = vadd.f32 %v242_v32, %v241_v11  ;;  %v253_v39 = vrot.slane %v252_v31, 4  ;;  %v261_v40 = vadd.f32 %v260_v33, %v259_v13 }
  0xa2   :  { %v270_v41 = vadd.f32 %v269_v34, %v268_v16  ;;  %v278_v42 = vsel %vm231_vm10, %v229_v28, 0.0  ;;  %v288_v43 = vadd.f32 %v287_v35, %v286_v17  ;;  %v296_v38 = vsel %vm231_vm10, %v230_v29, 0.0 }
  0xa3   :  { %v236_v44 = vadd.f32 %v235_v36, %v234_v30  ;;  %v244_v45 = vrot.slane %v243_v37, 4  ;;  %v254_v46 = vadd.f32 %v253_v39, %v252_v31  ;;  %v262_v47 = vrot.slane %v261_v40, 4  ;;  %v50_v30 = vpop.permute.xlu0 %49 }
  0xa4   :  { %v271_v48 = vrot.slane %v270_v41, 4  ;;  %v279_v49 = vadd.f32 %v278_v42, %v277_v20  ;;  %v289_v50 = vrot.slane %v288_v43, 4  ;;  %v297_v51 = vadd.f32 %v296_v38, %v295_v23 }
  0xa5   :  { %v237_v52 = vrot.slane %v236_v44, 2  ;;  %v245_v53 = vadd.f32 %v244_v45, %v243_v37  ;;  %v255_v54 = vrot.slane %v254_v46, 2  ;;  %v263_v55 = vadd.f32 %v262_v47, %v261_v40 }
  0xa6   :  { %v272_v56 = vadd.f32 %v271_v48, %v270_v41  ;;  %v280_v57 = vrot.slane %v279_v49, 4  ;;  %v290_v58 = vadd.f32 %v289_v50, %v288_v43  ;;  %v298_v59 = vrot.slane %v297_v51, 4 }
  0xa7   :  { %v238_v60 = vadd.f32 %v237_v52, %v236_v44  ;;  %v246_v61 = vrot.slane %v245_v53, 2  ;;  %v256_v62 = vadd.f32 %v255_v54, %v254_v46  ;;  %v264_v63 = vrot.slane %v263_v55, 2 }
  0xa8   :  { %v273_v0 = vrot.slane %v272_v56, 2  ;;  %v281_v1 = vadd.f32 %v280_v57, %v279_v49  ;;  %v291_v2 = vrot.slane %v290_v58, 2  ;;  %v299_v3 = vadd.f32 %v298_v59, %v297_v51 }
  0xa9   :  { %v239_v4 = vrot.slane %v238_v60, 1  ;;  %v247_v5 = vadd.f32 %v246_v61, %v245_v53  ;;  %v257_v6 = vrot.slane %v256_v62, 1  ;;  %v265_v7 = vadd.f32 %v264_v63, %v263_v55 }
  0xaa   :  { %v274_v8 = vadd.f32 %v273_v0, %v272_v56  ;;  %v282_v9 = vrot.slane %v281_v1, 2  ;;  %v292_v10 = vadd.f32 %v291_v2, %v290_v58  ;;  %v300_v11 = vrot.slane %v299_v3, 2 }
  0xab   :  { %v248_v13 = vrot.slane %v247_v5, 1  ;;  %v266_v14 = vrot.slane %v265_v7, 1  ;;  %v240_v18 = vadd.f32 %v239_v4, %v238_v60  ;;  %v258_v20 = vadd.f32 %v257_v6, %v256_v62 }
  0xac   :  { %v275_v15 = vrot.slane %v274_v8, 1  ;;  %v283_v16 = vadd.f32 %v282_v9, %v281_v1  ;;  %v301_v17 = vadd.f32 %v300_v11, %v299_v3  ;;  %v293_v22 = vrot.slane %v292_v10, 1 }
  0xad   :  { %v249_v19 = vadd.f32 %v248_v13, %v247_v5  ;;  %v267_v23 = vadd.f32 %v266_v14, %v265_v7  ;;  %v52_v36 = vsel %vm46_vm3, %v50_v30, 0.0 }
  0xae   :  { %v284_v21 = vrot.slane %v283_v16, 1  ;;  %v302_v24 = vrot.slane %v301_v17, 1  ;;  %v276_v26 = vadd.f32 %v275_v15, %v274_v8  ;;  %v294_v31 = vadd.f32 %v293_v22, %v292_v10 }
  0xaf   :  { %v314_v25 = vsel %vm313_vm11, %v249_v19, %v240_v18 }
  0xb0   :  { %v316_v27 = vsel %vm315_vm12, %v258_v20, %v314_v25  ;;  %v285_v28 = vadd.f32 %v284_v21, %v283_v16  ;;  %v303_v33 = vadd.f32 %v302_v24, %v301_v17 }
  0xb1   :  { %v318_v29 = vsel %vm317_vm13, %v267_v23, %v316_v27 }
  0xb2   :  { %v320_v32 = vsel %vm319_vm14, %v276_v26, %v318_v29 }
  0xb3   :  { %v322_v34 = vsel %vm321_vm15, %v285_v28, %v320_v32 }
  0xb4   :  { %v324_v35 = vsel %vm323_vm0, %v294_v31, %v322_v34 }
  0xb5   :  { %v326_v37 = vsel %vm325_vm1, %v303_v33, %v324_v35 }
  0xb6   :  { %v328_v39 = vsub.f32 %v52_v36, %v326_v37 }
  0xb8   :  { %334 = vst [vmem:[#allocation6] sm:$0xff] %v328_v39 }
  0xb9   :  { %393 = shalt.err (!%p390_p9)
}
  0xba   :  { %344 = dma.vmem_to_hbm [thread:$0]  %s342_s1, 128, %s473_s2, [#allocation5]  }
  0xbb   :  { %404 = dma.done.wait [#allocation5], 128  }
  0xbc   :  { %405 = vsyncadd [#allocation5], 4294967168 }
  0xbd   :  { %348 = vsyncpa [#allocation4], 1 }
  0xbe   :  { %349 = vsyncpa [#allocation5], 1 }

</bundles_post_ra>
